<compile_context>
chip_gen: v7x
topology: tpu7x:2x2x1
jax: 0.10.0
libtpu: 0.0.40
codegen_flags: <defaults>
</compile_context>

<pallas_src>
import functools

import jax
import jax.numpy as jnp
from jax.experimental import pallas as pl
from jax.experimental.pallas import tpu as pltpu


def _round_up(x: int, m: int) -> int:
    return (x + m - 1) // m * m


# --------------------------- pass 1: conv matmul + BN batch stats ---------------------------
def _conv_stats_kernel(w_ref, p_ref, conv_ref, sum_ref, sq_ref):
    """One lane-dense MXU matmul per grid step + one-pass BN stat accumulation.

    w_ref    : (Cout, K)       reshaped conv weight (f32 or bf16), K = Cin*KH*KW
    p_ref    : (K, tile_m)     im2col patch tile, lanes = N*Ho*Wo (f32 or bf16)
    conv_ref : (Cout, tile_m)  raw conv output tile (f32)
    sum_ref  : (Cout, 1)       per-channel sum  (VMEM-resident accumulator output)
    sq_ref   : (Cout, 1)       per-channel sum of squares (accumulator output)
    """
    step = pl.program_id(0)

    @pl.when(step == 0)
    def _init():
        sum_ref[...] = jnp.zeros_like(sum_ref)
        sq_ref[...] = jnp.zeros_like(sq_ref)

    c = jnp.dot(w_ref[...], p_ref[...], preferred_element_type=jnp.float32)
    conv_ref[...] = c                                        # lane-dense store, no vreg hoarding
    sum_ref[...] += jnp.sum(c, axis=1, keepdims=True)        # (Cout, 1)
    sq_ref[...] += jnp.sum(c * c, axis=1, keepdims=True)     # (Cout, 1)


# --------------------------- pass 2: BN affine + activation epilogue ------------------------
def _affine_act_kernel(conv_ref, scale_ref, shift_ref, o_ref, *, act, neg_slope):
    """y = conv * scale + shift, then activation.  scale/shift are (Cout, 1)."""
    y = conv_ref[...] * scale_ref[...] + shift_ref[...]
    if act == "leaky_relu":
        y = jnp.where(y >= 0, y, neg_slope * y)
    elif act == "relu":
        y = jnp.maximum(y, 0.0)
    elif act == "sigmoid":
        y = jax.nn.sigmoid(y)
    elif act == "tanh":
        y = jnp.tanh(y)
    elif act != "none":
        raise ValueError(f"unknown activation: {act}")
    o_ref[...] = y.astype(o_ref.dtype)


# --------------------------- wrapper-side glue ----------------------------------------------
def _im2col_lane_major(x, KH, KW, stride, padding):
    """(N, Cin, H, W) -> (Cin*KH*KW, N*Ho*Wo) patches.

    K ordering (cin, kh, kw) matches weight_oihw.reshape(Cout, Cin*KH*KW); N is folded
    into the lane dimension so the kernel issues one large lane-dense matmul per tile.
    1x1 convs skip the tap stack entirely.
    """
    N, Cin, H, W = x.shape
    Ho = (H + 2 * padding - KH) // stride + 1
    Wo = (W + 2 * padding - KW) // stride + 1
    if KH == 1 and KW == 1 and padding == 0:
        xs = x[:, :, ::stride, ::stride] if stride != 1 else x
        return jnp.transpose(xs, (1, 0, 2, 3)).reshape(Cin, N * Ho * Wo), Ho, Wo
    xp = jnp.pad(x, ((0, 0), (0, 0), (padding, padding), (padding, padding)))
    taps = []
    for kh in range(KH):
        for kw in range(KW):
            taps.append(xp[:, :,
                           kh:kh + stride * (Ho - 1) + 1:stride,
                           kw:kw + stride * (Wo - 1) + 1:stride])   # (N, Cin, Ho, Wo)
    p = jnp.stack(taps, axis=0)                      # (KH*KW, N, Cin, Ho, Wo)
    p = jnp.transpose(p, (2, 0, 1, 3, 4))            # (Cin, KH*KW, N, Ho, Wo)
    return p.reshape(Cin * KH * KW, N * Ho * Wo), Ho, Wo


def conv_bn_act(x_nchw, weight_oihw, gamma, beta, *, stride=1, padding=0,
                eps=1e-3, act="leaky_relu", neg_slope=0.01,
                matmul_dtype=jnp.bfloat16, tile_m_target=2048):
    """NCHW in / NCHW out: Conv2d(bias=False) + BatchNorm2d(batch stats) + activation.

    matmul_dtype: MXU operand dtype (bf16 default, works on v5e/v6e/v7x); accumulation
    and the BN/activation epilogue are always f32.  tile_m_target: lane-tile size target
    (128-multiple); lower it on v7x (64 MiB VMEM) for very large Cout*K, raise it on
    v5e/v6e (128 MiB) to push closer to the HBM roofline.
    """
    N, Cin, H, W = x_nchw.shape
    Cout, Cin_w, KH, KW = weight_oihw.shape
    assert Cin == Cin_w, (Cin, Cin_w)

    patches, Ho, Wo = _im2col_lane_major(x_nchw.astype(matmul_dtype), KH, KW, stride, padding)
    K = Cin * KH * KW
    NM = N * Ho * Wo

    tile_m = min(_round_up(tile_m_target, 128), _round_up(NM, 128))
    NM_pad = _round_up(NM, tile_m)
    if NM_pad != NM:
        # Zero-padded lanes: conv of zero columns is zero -> BN stats unaffected
        # (we divide by the TRUE count); garbage epilogue lanes are sliced off below.
        patches = jnp.pad(patches, ((0, 0), (0, NM_pad - NM)))
    num_tiles = NM_pad // tile_m

    w_mat = weight_oihw.reshape(Cout, K).astype(matmul_dtype)
    itemsize = jnp.dtype(matmul_dtype).itemsize

    # ---- pass 1: conv + stats ---------------------------------------------------------
    # VMEM budget: resident weight + double-buffered patch/conv tiles + stats, 2x headroom,
    # capped at 48 MiB (safe under v7x's 64 MiB physical VMEM).
    step1_bytes = (Cout * K * itemsize + 2 * K * tile_m * itemsize
                   + 2 * Cout * tile_m * 4 + 4 * Cout * 4)
    vmem1 = int(min(48 << 20, max(4 << 20, 2 * step1_bytes + (1 << 20))))

    conv_flat, s, ss = pl.pallas_call(
        _conv_stats_kernel,
        grid=(num_tiles,),
        out_shape=(jax.ShapeDtypeStruct((Cout, NM_pad), jnp.float32),
                   jax.ShapeDtypeStruct((Cout, 1), jnp.float32),
                   jax.ShapeDtypeStruct((Cout, 1), jnp.float32)),
        in_specs=[
            pl.BlockSpec((Cout, K), lambda m: (0, 0)),        # weight, resident
            pl.BlockSpec((K, tile_m), lambda m: (0, m)),      # patch tile, pipelined
        ],
        out_specs=(
            pl.BlockSpec((Cout, tile_m), lambda m: (0, m)),   # raw conv tile
            pl.BlockSpec((Cout, 1), lambda m: (0, 0)),        # sum accumulator
            pl.BlockSpec((Cout, 1), lambda m: (0, 0)),        # sumsq accumulator
        ),
        compiler_params=pltpu.CompilerParams(
            dimension_semantics=("arbitrary",),               # BN reduction axis
            vmem_limit_bytes=vmem1),
        cost_estimate=pl.CostEstimate(
            flops=2 * Cout * K * NM_pad + 4 * Cout * NM_pad,
            transcendentals=0,
            bytes_accessed=w_mat.size * itemsize + K * NM_pad * itemsize + Cout * NM_pad * 4),
    )(w_mat, patches)

    # ---- wrapper: batch-norm scale/shift from global batch stats (training semantics) ---
    cnt = float(NM)                                            # true count N*Ho*Wo (not padded)
    mean = s / cnt                                             # (Cout, 1)
    var = jnp.maximum(ss / cnt - mean * mean, 0.0)             # clamp E[x^2]-E[x]^2 cancellation
    scale = gamma.reshape(Cout, 1).astype(jnp.float32) * jax.lax.rsqrt(var + eps)
    shift = beta.reshape(Cout, 1).astype(jnp.float32) - mean * scale

    # ---- pass 2: affine + activation, parallel over tiles ------------------------------
    step2_bytes = 2 * (2 * Cout * tile_m * 4) + 4 * Cout * 4
    vmem2 = int(min(48 << 20, max(4 << 20, 2 * step2_bytes + (1 << 20))))
    kernel2 = functools.partial(_affine_act_kernel, act=act, neg_slope=neg_slope)

    out_flat = pl.pallas_call(
        kernel2,
        grid=(num_tiles,),
        out_shape=jax.ShapeDtypeStruct((Cout, NM_pad), jnp.float32),
        in_specs=[
            pl.BlockSpec((Cout, tile_m), lambda m: (0, m)),
            pl.BlockSpec((Cout, 1), lambda m: (0, 0)),
            pl.BlockSpec((Cout, 1), lambda m: (0, 0)),
        ],
        out_specs=pl.BlockSpec((Cout, tile_m), lambda m: (0, m)),
        compiler_params=pltpu.CompilerParams(
            dimension_semantics=("parallel",),                # shards over v7x's 2 TCs
            vmem_limit_bytes=vmem2),
        cost_estimate=pl.CostEstimate(
            flops=4 * Cout * NM_pad,
            transcendentals=Cout * NM_pad if act in ("sigmoid", "tanh") else 0,
            bytes_accessed=2 * Cout * NM_pad * 4),
    )(conv_flat, scale, shift)

    # (Cout, N*Ho*Wo) -> NCHW: one cheap wrapper-side transpose of the small result.
    out = out_flat[:, :NM].reshape(Cout, N, Ho, Wo)
    return jnp.transpose(out, (1, 0, 2, 3))


# --------------------------- pure-JAX reference (same training-mode BN) ---------------------
def _reference(x, w, gamma, beta, *, stride, padding, eps, act="leaky_relu", neg_slope=0.01):
    conv = jax.lax.conv_general_dilated(
        x, w, window_strides=(stride, stride),
        padding=((padding, padding), (padding, padding)),
        dimension_numbers=("NCHW", "OIHW", "NCHW"))
    mean = conv.mean(axis=(0, 2, 3), keepdims=True)
    var = ((conv - mean) ** 2).mean(axis=(0, 2, 3), keepdims=True)
    y = (conv - mean) * jax.lax.rsqrt(var + eps) * gamma.reshape(1, -1, 1, 1) \
        + beta.reshape(1, -1, 1, 1)
    if act == "leaky_relu":
        return jnp.where(y >= 0, y, neg_slope * y)
    if act == "relu":
        return jnp.maximum(y, 0.0)
    if act == "sigmoid":
        return jax.nn.sigmoid(y)
    if act == "tanh":
        return jnp.tanh(y)
    return y


if __name__ == "__main__":
    key = jax.random.PRNGKey(0)
    keys = jax.random.split(key, 8)

    # Small shapes consistent with a scaled-down VQVAE conv block.
    N, Cin, H, W = 2, 8, 16, 16
    Cout = 16

    x = jax.random.normal(keys[0], (N, Cin, H, W), dtype=jnp.float32)
    gamma = 1.0 + 0.1 * jax.random.normal(keys[1], (Cout,), dtype=jnp.float32)
    beta = 0.1 * jax.random.normal(keys[2], (Cout,), dtype=jnp.float32)

    # Conv/activation configs actually used in VQVAE:
    #   3x3/s1/p1 + leaky (BasicConv2d / conv3x3), 1x1/s1/p0 + leaky (conv1x1 / Inception red.),
    #   4x4/s2/p1 + leaky (Encoder stem), 3x3 + relu (ResBlock), 3x3 + sigmoid/tanh (Decoder out).
    configs = [
        (keys[3], 3, 3, 1, 1, "leaky_relu"),
        (keys[4], 1, 1, 1, 0, "leaky_relu"),
        (keys[5], 4, 4, 2, 1, "leaky_relu"),
        (keys[3], 3, 3, 1, 1, "relu"),
        (keys[3], 3, 3, 1, 1, "sigmoid"),
        (keys[3], 3, 3, 1, 1, "tanh"),
    ]
    for wk, KH, KW, stride, padding, act in configs:
        w = 0.1 * jax.random.normal(wk, (Cout, Cin, KH, KW), dtype=jnp.float32)
        out = conv_bn_act(x, w, gamma, beta, stride=stride, padding=padding, eps=1e-3,
                          act=act, matmul_dtype=jnp.float32, tile_m_target=128)
        out = jax.block_until_ready(out)
        ref = _reference(x, w, gamma, beta, stride=stride, padding=padding, eps=1e-3, act=act)
        assert out.shape == ref.shape, (out.shape, ref.shape)
        assert jnp.allclose(out, ref, atol=2e-4, rtol=2e-4), \
            f"f32 mismatch for {KH}x{KW}/s{stride}/p{padding}/{act}"

    # Default bf16 MXU-operand path (valid on v5e/v6e/v7x); f32 accumulation + f32 epilogue.
    w = 0.1 * jax.random.normal(keys[6], (Cout, Cin, 3, 3), dtype=jnp.float32)
    out_bf16 = conv_bn_act(x, w, gamma, beta, stride=1, padding=1, eps=1e-3)
    out_bf16 = jax.block_until_ready(out_bf16)
    ref = _reference(x, w, gamma, beta, stride=1, padding=1, eps=1e-3)
    assert jnp.allclose(out_bf16, ref, atol=5e-2, rtol=5e-2), "bf16 mismatch"

    # Mini Encoder(use_inception=False) composition: Conv4x4/s2+BN+leaky -> BasicConv2d(3x3).
    w_stem = 0.1 * jax.random.normal(keys[5], (Cout, Cin, 4, 4), dtype=jnp.float32)
    w_3x3 = 0.1 * jax.random.normal(keys[7], (Cout, Cout, 3, 3), dtype=jnp.float32)
    y1 = conv_bn_act(x, w_stem, gamma, beta, stride=2, padding=1, eps=1e-5,
                     matmul_dtype=jnp.float32, tile_m_target=128)
    y2 = conv_bn_act(y1, w_3x3, gamma, beta, stride=1, padding=1, eps=1e-3,
                     matmul_dtype=jnp.float32, tile_m_target=128)
    y2 = jax.block_until_ready(y2)
    r1 = _reference(x, w_stem, gamma, beta, stride=2, padding=1, eps=1e-5)
    r2 = _reference(r1, w_3x3, gamma, beta, stride=1, padding=1, eps=1e-3)
    assert jnp.allclose(y2, r2, atol=5e-4, rtol=5e-4), "encoder-chain mismatch"

    print("KERNEL_OK")
</pallas_src>

<mosaic_0001>
module attributes {stable_mosaic.version = 11 : i64} {
  func.func @_conv_stats_kernel(%arg0: i32, %arg1: memref<16x72xf32, #tpu.memory_space<vmem>>, %arg2: memref<72x128xf32, #tpu.memory_space<vmem>>, %arg3: memref<16x128xf32, #tpu.memory_space<vmem>>, %arg4: memref<16x1xf32, #tpu.memory_space<vmem>>, %arg5: memref<16x1xf32, #tpu.memory_space<vmem>>) attributes {dimension_semantics = [#tpu.dimension_semantics<arbitrary>], iteration_bounds = array<i64: 4>, scalar_prefetch = 0 : i64, scratch_operands = 0 : i64, tpu.core_type = #tpu.core_type<tc>, window_params = [{pipeline_mode = #tpu.pipeline_mode<synchronous>, transform_indices = @transform_0, window_bounds = array<i64: 16, 72>}, {transform_indices = @transform_1, window_bounds = array<i64: 72, 128>}, {transform_indices = @transform_2, window_bounds = array<i64: 16, 128>}, {pipeline_mode = #tpu.pipeline_mode<synchronous>, transform_indices = @transform_3, window_bounds = array<i64: 16, 1>}, {pipeline_mode = #tpu.pipeline_mode<synchronous>, transform_indices = @transform_4, window_bounds = array<i64: 16, 1>}]} {
    %c0_i32 = arith.constant 0 : i32
    %0 = arith.cmpi eq, %arg0, %c0_i32 : i32
    %1 = arith.extui %0 : i1 to i32
    %c0_i32_0 = arith.constant 0 : i32
    %2 = arith.cmpi ne, %1, %c0_i32_0 : i32
    scf.if %2 {
      %cst_16 = arith.constant 0.000000e+00 : f32
      %18 = vector.broadcast %cst_16 : f32 to vector<16x1xf32>
      %c0_17 = arith.constant 0 : index
      %c0_18 = arith.constant 0 : index
      %19 = vector.load %arg4[%c0_17, %c0_18] : memref<16x1xf32, #tpu.memory_space<vmem>>, vector<16x1xf32>
      tpu.vector_store %arg4[%c0_17, %c0_18], %18 {strides = array<i32>} : memref<16x1xf32, #tpu.memory_space<vmem>>, vector<16x1xf32>,
      %cst_19 = arith.constant 0.000000e+00 : f32
      %20 = vector.broadcast %cst_19 : f32 to vector<16x1xf32>
      %c0_20 = arith.constant 0 : index
      %c0_21 = arith.constant 0 : index
      %21 = vector.load %arg5[%c0_20, %c0_21] : memref<16x1xf32, #tpu.memory_space<vmem>>, vector<16x1xf32>
      tpu.vector_store %arg5[%c0_20, %c0_21], %20 {strides = array<i32>} : memref<16x1xf32, #tpu.memory_space<vmem>>, vector<16x1xf32>,
    } else {
    }
    %c0 = arith.constant 0 : index
    %c0_1 = arith.constant 0 : index
    %3 = vector.load %arg1[%c0, %c0_1] : memref<16x72xf32, #tpu.memory_space<vmem>>, vector<16x72xf32>
    %c0_2 = arith.constant 0 : index
    %c0_3 = arith.constant 0 : index
    %4 = vector.load %arg2[%c0_2, %c0_3] : memref<72x128xf32, #tpu.memory_space<vmem>>, vector<72x128xf32>
    %cst = arith.constant dense<0.000000e+00> : vector<16x128xf32>
    %5 = tpu.matmul %3, %4, %cst {dimension_numbers = #tpu.dot_dimension_numbers<[1], [0], [0], [1], [0, 0, 1, 1], [], []>} : vector<16x72xf32>, vector<72x128xf32>, vector<16x128xf32> -> vector<16x128xf32>
    %c0_4 = arith.constant 0 : index
    %c0_5 = arith.constant 0 : index
    %6 = vector.load %arg3[%c0_4, %c0_5] : memref<16x128xf32, #tpu.memory_space<vmem>>, vector<16x128xf32>
    tpu.vector_store %arg3[%c0_4, %c0_5], %5 {strides = array<i32>} : memref<16x128xf32, #tpu.memory_space<vmem>>, vector<16x128xf32>,
    %c0_6 = arith.constant 0 : index
    %c0_7 = arith.constant 0 : index
    %7 = vector.load %arg4[%c0_6, %c0_7] : memref<16x1xf32, #tpu.memory_space<vmem>>, vector<16x1xf32>
    %cst_8 = arith.constant dense<0.000000e+00> : vector<16xf32>
    %8 = vector.multi_reduction <add>, %5, %cst_8 [1] : vector<16x128xf32> to vector<16xf32>
    %9 = vector.shape_cast %8 : vector<16xf32> to vector<16x1xf32>
    %10 = arith.addf %7, %9 : vector<16x1xf32>
    %c0_9 = arith.constant 0 : index
    %c0_10 = arith.constant 0 : index
    %11 = vector.load %arg4[%c0_9, %c0_10] : memref<16x1xf32, #tpu.memory_space<vmem>>, vector<16x1xf32>
    tpu.vector_store %arg4[%c0_9, %c0_10], %10 {strides = array<i32>} : memref<16x1xf32, #tpu.memory_space<vmem>>, vector<16x1xf32>,
    %c0_11 = arith.constant 0 : index
    %c0_12 = arith.constant 0 : index
    %12 = vector.load %arg5[%c0_11, %c0_12] : memref<16x1xf32, #tpu.memory_space<vmem>>, vector<16x1xf32>
    %13 = arith.mulf %5, %5 : vector<16x128xf32>
    %cst_13 = arith.constant dense<0.000000e+00> : vector<16xf32>
    %14 = vector.multi_reduction <add>, %13, %cst_13 [1] : vector<16x128xf32> to vector<16xf32>
    %15 = vector.shape_cast %14 : vector<16xf32> to vector<16x1xf32>
    %16 = arith.addf %12, %15 : vector<16x1xf32>
    %c0_14 = arith.constant 0 : index
    %c0_15 = arith.constant 0 : index
    %17 = vector.load %arg5[%c0_14, %c0_15] : memref<16x1xf32, #tpu.memory_space<vmem>>, vector<16x1xf32>
    tpu.vector_store %arg5[%c0_14, %c0_15], %16 {strides = array<i32>} : memref<16x1xf32, #tpu.memory_space<vmem>>, vector<16x1xf32>,
    return
  }
  func.func @transform_0(%arg0: i32) -> (i32, i32) {
    %c0_i32 = arith.constant 0 : i32
    %c0_i32_0 = arith.constant 0 : i32
    %c0_i32_1 = arith.constant 0 : i32
    return %c0_i32, %c0_i32_0 : i32, i32
  }
  func.func @transform_1(%arg0: i32) -> (i32, i32) {
    %c0_i32 = arith.constant 0 : i32
    %c0_i32_0 = arith.constant 0 : i32
    return %c0_i32, %arg0 : i32, i32
  }
  func.func @transform_2(%arg0: i32) -> (i32, i32) {
    %c0_i32 = arith.constant 0 : i32
    %c0_i32_0 = arith.constant 0 : i32
    return %c0_i32, %arg0 : i32, i32
  }
  func.func @transform_3(%arg0: i32) -> (i32, i32) {
    %c0_i32 = arith.constant 0 : i32
    %c0_i32_0 = arith.constant 0 : i32
    %c0_i32_1 = arith.constant 0 : i32
    return %c0_i32, %c0_i32_0 : i32, i32
  }
  func.func @transform_4(%arg0: i32) -> (i32, i32) {
    %c0_i32 = arith.constant 0 : i32
    %c0_i32_0 = arith.constant 0 : i32
    %c0_i32_1 = arith.constant 0 : i32
    return %c0_i32, %c0_i32_0 : i32, i32
  }
}

</mosaic_0001>

<bundles_post_ra>
// kernel: tpu_custom_call.1
= control target key start
LH: loop header
LB: loop body
LE: loop exit
PB: predicated region body
PF: predicated region fallthrough
CT: control target
= control target key end

     0   :  { %10 = vsyncpa [#allocation3], 0  ;;  %s1017_s0 = inlined_call_operand.hbm [shape: f32[16,72], index: 0, kind: input, shape index: {}]   ;;  %s1018_s1 = inlined_call_operand.hbm [shape: f32[72,512], index: 1, kind: input, shape index: {}]   ;;  %s1019_s2 = inlined_call_operand.hbm [shape: f32[16,512], index: 2, kind: output, shape index: {0}]   ;;  %s1020_s3 = inlined_call_operand.vmem [shape: f32[16,1], index: 3, kind: output, shape index: {1}]   ;;  %s1021_s4 = inlined_call_operand.vmem [shape: f32[16,1], index: 4, kind: output, shape index: {2}]  }
   0x1   :  { %11 = vsyncpa [#allocation6], 0 }
   0x2   :  { %13 = vsyncpa [#allocation6 + $0x1], 0 }
   0x3   :  { %14 = vsyncpa [#allocation4], 0 }
   0x4   :  { %16 = vsyncpa [#allocation4 + $0x1], 0  ;;  %s756_s15 = smov 0   ;;  %s758_s16 = smov 0  }
   0x5   :  { %s760_s17 = smov 0   ;;  %s762_s18 = smov 0  }
   0x6 LB: > { %s777_s19 = sadd.s32 4294967295, %s719_s18   ;;  %s462_s20 = sadd.s32 4294967294, %s719_s18   ;;  %s719_s18 = sphi %s762_s18, %s1045_s18   ;;  %s715_s17 = sphi %s760_s17, %s1044_s17   ;;  %s711_s16 = sphi %s758_s16, %s1043_s16   ;;  %s707_s15 = sphi %s756_s15, %s1042_s15  }
   0x7   : > { %s781_s21 = sadd.s32 1, %s719_s18   ;;  %s50_s22 = sadd.s32 1, %s715_s17 }
   0x8   : > { %s47_s23 = ssub.s32 %s719_s18, %s781_s21  ;;  %p57_p0 = scmp.ne.s32.totalorder %s715_s17, %s711_s16 }
   0x9   : > { %p48_p1 = scmp.eq.s32.totalorder %s47_s23, 0  ;;  %p58_p2 = scmp.eq.s32.totalorder %s719_s18, 0 }
   0xa   : > { %p63_p3 = scmp.ne.s32.totalorder %s711_s16, %s707_s15  ;;  %p1022_p4 = scmp.eq.s32.totalorder %s777_s19, 0 }
   0xb   : > { %s793_s24 = scalar_select %p48_p1, %s715_s17, %s50_s22  }
   0xc   : > { %p795_p5 = por %p58_p2, %p57_p0  ;;  %p801_p6 = por %p1022_p4, %p63_p3 }
   0xd   : > { %p87_p7 = scmp.eq.s32.totalorder %s777_s19, 3  ;;  %p93_p8 = scmp.eq.s32.totalorder %s462_s20, 3 }
   0xe   : > { %s1026_s25 = scalar_select %p795_p5, 1, 0 }
   0xf   : > { %s1027_s26 = scalar_select %p801_p6, 1, 0 }
  0x10   : > { %p463_p9 = scmp.ge.s32.totalorder %s719_s18, 1  ;;  %p142_p10 = scmp.lt.s32.totalorder %s719_s18, 5 }
  0x11   : > { %p808_p11 = por %p87_p7, %p57_p0  ;;  %p812_p12 = por %p93_p8, %p63_p3 }
  0x12   : > { %p816_p13 = pnand %p463_p9, %p142_p10  ;;  %s721_s30 = smov [#allocation2]  }
  0x13   : > { %s1028_s27 = scalar_select %p808_p11, 1, 0 }
  0x14   : > { %s1029_s28 = scalar_select %p812_p12, 1, 0 }
  0x15   : > { %s1030_s29 = scalar_select %p816_p13, 1, 0 }
  0x16   : > { %p535_p2 = pneg %p816_p13  ;;  %s154_s5 = sshll.u32 %s721_s30, 4  ;;  %s155_s5 = int_to_ptr.vmem [resolvable:$true] %s154_s5 }
  0x17   : > { %s168_s7 = sand.u32 1, %s715_s17   ;;  %s591_s10 = scalar_lea.hbm %s1017_s0, 256 }
  0x18   : > { %p825_p0 = pnand %p535_p2, %p1022_p4  ;;  %p592_p7 = scmp.ne.s32.totalorder %s1017_s0, %s591_s10 }
  0x19   : > { %p598_p2 = scmp.lt.u32.totalorder %s591_s10, %s1017_s0 }
  0x1a   : > { %p593_p8 = pneg %p825_p0 }
  0x1c   : > { %p594_p9 = pnand %p593_p8, %p592_p7 }
  0x1e   : > { %p595_p10 = pneg %p594_p9 }
  0x20   : > { %p600_p1 = pnand %p598_p2, %p595_p10 }
  0x22   : > { %603 = shalt.err (!%p600_p1)
}
  0x23   : > { %s604_s20 = scalar_lea.vmem %s155_s5, 256  ;;  %p612_p11 = scmp.lt.s32.totalorder %s155_s5, %s155_s5 }
  0x24   : > { %p605_p4 = scmp.ne.s32.totalorder %s155_s5, %s604_s20  ;;  %p613_p6 = scmp.lt.s32.totalorder %s604_s20, %s604_s20 }
  0x26   : > { %p607_p3 = pnand %p605_p4, %p593_p8  ;;  %p614_p13 = por %p613_p6, %p612_p11 }
  0x28   : > { %p608_p12 = pneg %p607_p3 }
  0x2a   : > { %p615_p5 = pnand %p614_p13, %p608_p12 }
  0x2c   : > { %618 = shalt.err (!%p615_p5)
}
  0x2d   : > { %s722_s22 = smov 128   ;;  %s723_s23 = smov 8  }
  0x2e   : > { %538 = dma.hbm_to_vmem [thread:$0]  (!%p825_p0), %s1017_s0, 256, %s155_s5, [#allocation3], %s722_s22, %s722_s22, %s723_s23  }
  0x2f   : > { %p1032_p4 = scmp.ne.s32.totalorder %s1026_s25, 0  ;;  %p1033_p1 = scmp.lt.s32.totalorder %s719_s18, 4 }
  0x30   : > { %s525_s10 = smul.u32 72, %s168_s7  ;;  %s466_s11 = sshll.u32 %s719_s18, 7 }
  0x31   : > { %p854_p3 = pnand %p1033_p1, %p1032_p4  ;;  %s862_s6 = scalar_lea.hbm %s1018_s1, %s466_s11 }
  0x32   : > { %s172_s5 = scalar_lea.vmem [#allocation5], %s525_s10  ;;  %s866_s14 = scalar_lea.sflag [#allocation6], %s168_s7 }
  0x33   : > { %s178_s25 = sshll.u32 %s172_s5, 4  ;;  %s619_s20 = scalar_lea.hbm %s862_s6, 1152  ;;  %s864_s25 = int_to_ptr.vmem [resolvable:$true] %s178_s25 }
  0x34   : > { %p620_p5 = scmp.ne.s32.totalorder %s862_s6, %s619_s20  ;;  %p621_p6 = pneg %p854_p3 }
  0x35   : > { %s624_s11 = scalar_lea.hbm %s1018_s1, 4608  ;;  %p625_p13 = scmp.lt.u32.totalorder %s862_s6, %s1018_s1 }
  0x36   : > { %p622_p11 = pnand %p621_p6, %p620_p5  ;;  %p626_p0 = scmp.lt.u32.totalorder %s624_s11, %s619_s20 }
  0x37   : > { %p628_p8 = scmp.lt.u32.totalorder %s619_s20, %s862_s6 }
  0x38   : > { %p623_p12 = pneg %p622_p11  ;;  %p627_p7 = por %p626_p0, %p625_p13 }
  0x3a   : > { %p629_p9 = por %p628_p8, %p627_p7 }
  0x3c   : > { %p630_p10 = pnand %p629_p9, %p623_p12 }
  0x3e   : > { %633 = shalt.err (!%p630_p10)
}
  0x3f   : > { %s634_s7 = scalar_lea.vmem %s864_s25, 1152  ;;  %s724_s10 = smov [#allocation5]  }
  0x40   : > { %p635_p2 = scmp.ne.s32.totalorder %s864_s25, %s634_s7  ;;  %s639_s5 = sshll.u32 %s724_s10, 4  ;;  %s640_s5 = int_to_ptr.vmem [resolvable:$false] %s639_s5 }
  0x41   : > { %s641_s30 = scalar_lea.vmem %s640_s5, 2304  ;;  %p642_p5 = scmp.lt.s32.totalorder %s864_s25, %s640_s5 }
  0x42   : > { %p637_p4 = pnand %p635_p2, %p621_p6  ;;  %p643_p11 = scmp.lt.s32.totalorder %s641_s30, %s634_s7 }
  0x44   : > { %p638_p1 = pneg %p637_p4  ;;  %p644_p13 = por %p643_p11, %p642_p5 }
  0x46   : > { %p645_p0 = pnand %p644_p13, %p638_p1 }
  0x48   : > { %648 = shalt.err (!%p645_p0)
}
  0x49   : > { %s725_s20 = smov 512   ;;  %p1035_p6 = scmp.ne.s32.totalorder %s1030_s29, 0 }
  0x4a   : > { %542 = dma.hbm_to_vmem [thread:$0]  (!%p854_p3), %s862_s6, 1152, %s864_s25, %s866_s14, %s725_s20, %s722_s22, %s723_s23  }
  0x4b   : > { %190 = sbr.rel (%p1035_p6) target bundleno = 482 (0x1e2), region = 28  ;;  %p1036_p12 = scmp.eq.s32.totalorder (!%p1035_p6), %s777_s19, 0 }
  0x52   : > { %694 = dma.done.wait (%p1036_p12), [#allocation3], 256   ;;  %p1037_p7 = pmov %p1036_p12 }
  0x53   : > { %s903_s8 = sand.u32 1, %s711_s16   ;;  %p1038_p3 = scmp.ne.s32.totalorder %s1027_s26, 0 }
  0x54   : > { %696 = vsyncadd (%p1037_p7), [#allocation3], 4294967040  ;;  %s526_s9 = smul.u32 72, %s903_s8  ;;  %s197_s11 = scalar_lea.sflag [#allocation6], %s903_s8 }
  0x56   : > { %s907_s12 = scalar_lea.vmem [#allocation5], %s526_s9 }
  0x57   : > { %698 = dma.done.wait (%p1038_p3), %s197_s11, 1152  }
  0x58   : > { %700 = vsyncadd (%p1038_p3), %s197_s11, 4294966144  ;;  %s469_s29 = sshll.u32 %s903_s8, 4  ;;  %p1039_p8 = scmp.ne.s32.totalorder %s777_s19, 0 }
  0x59   : > { %s914_s22 = scalar_lea.vmem [#allocation7], %s469_s29  ;;  %vm229_vm0 = vcmask (!%p1039_p8), 7168   ;;  %v726_v0 = vmov (!%p1039_p8), 0.0  }
  0x5a   : > { %228 = sbr.rel (%p1039_p8) target bundleno = 97 (0x61), region = 40  ;;  %230 = vst.msk [vmem:[%s1020_s3] sm:$0xff] (!%p1039_p8), %vm229_vm0, %v726_v0  ;;  %231 = vst.msk [vmem:[%s1020_s3 + $0x8] sm:$0xff] (!%p1039_p8), %vm229_vm0, %v726_v0 }
  0x5b   : > { %232 = vst.msk [vmem:[%s1021_s4] sm:$0xff] (!%p1039_p8), %vm229_vm0, %v726_v0  ;;  %233 = vst.msk [vmem:[%s1021_s4 + $0x8] sm:$0xff] (!%p1039_p8), %vm229_vm0, %v726_v0 }
  0x61 PF: > { %v236_v1 = vld [vmem:[%s907_s12] sm:$0xff]  ;;  %v237_v2 = vld [vmem:[%s907_s12 + $0x8] sm:$0xff]  ;;  %v238_v3 = vld [vmem:[%s907_s12 + $0x10] sm:$0xff]  ;;  %vm245_vm1 = vcmask 588800   ;;  %s474_s5 = sshll.u32 %s777_s19, 7  ;;  %s365_s30 = sshll.u32 %s914_s22, 4  ;;  %s950_s30 = int_to_ptr.vmem [resolvable:$true] %s365_s30 }
  0x62   : > { %v509_v4 = vpack.c.bf16 %v237_v2, %v236_v1  ;;  %v239_v5 = vld [vmem:[%s907_s12 + $0x18] sm:$0xff]  ;;  %v240_v7 = vld [vmem:[%s907_s12 + $0x20] sm:$0xff]  ;;  %v241_v8 = vld [vmem:[%s907_s12 + $0x28] sm:$0xff]  ;;  %s948_s11 = scalar_lea.hbm %s1019_s2, %s474_s5  ;;  %s649_s29 = scalar_lea.vmem %s950_s30, 256 }
  0x63   : > { %v513_v6 = vpack.c.bf16 %v239_v5, %v238_v3  ;;  %v234_v9 = vld [vmem:[#allocation2] sm:$0xff]  ;;  %v517_v10 = vpack.c.bf16 %v241_v8, %v240_v7  ;;  %v243_v12 = vld [vmem:[%s907_s12 + $0x38] sm:$0xff]  ;;  %v244_v14 = vld [vmem:[%s907_s12 + $0x40] sm:$0xff]  ;;  %p650_p9 = scmp.ne.s32.totalorder %s950_s30, %s649_s29  ;;  %p1040_p10 = scmp.ne.s32.totalorder %s1028_s27, 0 }
  0x64   : > { %510 = vmatprep.subr.bf16.mxu0 %v509_v4  ;;  %506 = vmatprep.mubr.msk.f32.mxu0 %vm245_vm1, %v234_v9  ;;  %v242_v11 = vld [vmem:[%s907_s12 + $0x30] sm:$0xff]  ;;  %s353_s12 = scalar_lea.sflag [#allocation4], %s903_s8  ;;  %s727_s23 = smov [#allocation7]  }
  0x65   : > { %512 = vmatpush3.bf16.msra.mxu0 %v509_v4  ;;  %v521_v13 = vpack.c.bf16 %v243_v12, %v242_v11  ;;  %v235_v15 = vld [vmem:[#allocation2 + $0x8] sm:$0xff]  ;;  %p651_p2 = pnand %p650_p9, %p1040_p10  ;;  %s653_s6 = sshll.u32 %s727_s23, 4  ;;  %s654_s6 = int_to_ptr.vmem [resolvable:$false] %s653_s6 }
  0x66   : > { %514 = vmatprep.subr.bf16.mxu0 %v513_v6  ;;  %s655_s19 = scalar_lea.vmem %s654_s6, 512  ;;  %p656_p1 = scmp.lt.s32.totalorder %s950_s30, %s654_s6 }
  0x67   : > { %p652_p4 = pneg %p651_p2  ;;  %p657_p5 = scmp.lt.s32.totalorder %s655_s19, %s649_s29 }
  0x69   : > { %516 = vmatpush3.bf16.msra.mxu0 %v513_v6  ;;  %p658_p11 = por %p657_p5, %p656_p1 }
  0x6a   : > { %518 = vmatprep.subr.bf16.mxu0 %v517_v10 }
  0x6b   : > { %p659_p13 = pnand %p658_p11, %p652_p4 }
  0x6d   : > { %520 = vmatpush3.bf16.msra.mxu0 %v517_v10 }
  0x6e   : > { %522 = vmatprep.subr.bf16.mxu0 %v521_v13 }
  0x71   : > { %524 = vmatpush3.bf16.msra.mxu0 %v521_v13 }
  0x72   : > { %504 = vmatprep.subr.mxu0 %v244_v14 }
  0x75   : > { %505 = vmatpush3.msra.mxu0 %v244_v14 }
  0x76   : > { %507 = vmatmul.mubr.msk.f32.vlgmr.msra.gmra.mrb[0].mxu0 %vm245_vm1, %v235_v15 }
 0x149   : > { %v508_v16 = vpop.f32.mrb[0].mxu0 }
 0x14a   : > { %328 = vst [vmem:[%s914_s22 + $0x8] sm:$0xff] %v508_v16  ;;  %v318_v17 = vpop.f32.mrb[1].mxu0  ;;  %v343_v19 = vmul.f32 %v508_v16, %v508_v16 }
 0x14b   : > { %327 = vst [vmem:[%s914_s22] sm:$0xff] %v318_v17  ;;  %331 = vadd.xlane.f32.xlu0 %v318_v17  ;;  %v342_v18 = vmul.f32 %v318_v17, %v318_v17 }
 0x14d   : > { %344 = vadd.xlane.f32.xlu1 %v342_v18 }
 0x14f   : > { %333 = vadd.xlane.f32.xlu0 %v508_v16 }
 0x151   : > { %346 = vadd.xlane.f32.xlu1 %v343_v19 }
 0x152   : > { %662 = shalt.err (!%p659_p13)
}
 0x153   : > { %s663_s22 = scalar_lea.hbm %s948_s11, 256  ;;  %s667_s13 = scalar_lea.hbm %s1019_s2, 1024 }
 0x154   : > { %p664_p0 = scmp.ne.s32.totalorder %s948_s11, %s663_s22  ;;  %p668_p7 = scmp.lt.u32.totalorder %s948_s11, %s1019_s2 }
 0x155   : > { %p669_p3 = scmp.lt.u32.totalorder %s667_s13, %s663_s22  ;;  %p671_p9 = scmp.lt.u32.totalorder %s663_s22, %s948_s11 }
 0x156   : > { %p665_p6 = pnand %p664_p0, %p1040_p10 }
 0x157   : > { %p670_p8 = por %p669_p3, %p668_p7 }
 0x158   : > { %p666_p12 = pneg %p665_p6 }
 0x159   : > { %p672_p2 = por %p671_p9, %p670_p8 }
 0x15b   : > { %p673_p4 = pnand %p672_p2, %p666_p12 }
 0x15d   : > { %676 = shalt.err (!%p673_p4)
}
 0x15e   : > { %s728_s10 = smov 128   ;;  %s729_s5 = smov 512   ;;  %v329_v20 = vld [vmem:[%s1020_s3] sm:$0xff]  ;;  %vm337_vm2 = vcmask 7168   ;;  %v330_v25 = vld [vmem:[%s1020_s3 + $0x8] sm:$0xff] }
 0x15f   : > { %s730_s20 = smov 8   ;;  %v340_v22 = vld [vmem:[%s1021_s4] sm:$0xff]  ;;  %v341_v28 = vld [vmem:[%s1021_s4 + $0x8] sm:$0xff] }
 0x160   : > { %533 = dma.vmem_to_hbm [thread:$0]  (%p1040_p10), %s950_s30, 256, %s948_s11, %s353_s12, %s728_s10, %s729_s5, %s730_s20  }
 0x1d8   : > { %v332_v21 = vpop.xlane.xlu0 %331 }
 0x1d9   : > { %v335_v23 = vadd.f32 %v332_v21, %v329_v20 }
 0x1da   : > { %v345_v24 = vpop.xlane.xlu1 %344 }
 0x1db   : > { %338 = vst.msk [vmem:[%s1020_s3] sm:$0xff] %vm337_vm2, %v335_v23  ;;  %v348_v26 = vadd.f32 %v345_v24, %v340_v22 }
 0x1dc   : > { %v334_v27 = vpop.xlane.xlu0 %333 }
 0x1dd   : > { %350 = vst.msk [vmem:[%s1021_s4] sm:$0xff] %vm337_vm2, %v348_v26  ;;  %v336_v29 = vadd.f32 %v334_v27, %v330_v25 }
 0x1de   : > { %v347_v30 = vpop.xlane.xlu1 %346 }
 0x1df   : > { %339 = vst.msk [vmem:[%s1020_s3 + $0x8] sm:$0xff] %vm337_vm2, %v336_v29  ;;  %v349_v31 = vadd.f32 %v347_v30, %v341_v28 }
 0x1e1   : > { %351 = vst.msk [vmem:[%s1021_s4 + $0x8] sm:$0xff] %vm337_vm2, %v349_v31 }
 0x1e2 PF: > { %p550_p10 = scmp.ge.s32.totalorder %s719_s18, 2  ;;  %s392_s10 = sand.u32 1, %s707_s15  }
 0x1e3   : > { %p1041_p1 = scmp.ne.s32.totalorder %s1029_s28, 0  ;;  %s393_s5 = scalar_lea.sflag [#allocation4], %s392_s10 }
 0x1e5   : > { %p544_p5 = pnand %p550_p10, %p1041_p1 }
 0x1e7   : > { %702 = dma.done.wait (!%p544_p5), %s393_s5, 256  }
 0x1e8   : > { %704 = vsyncadd (!%p544_p5), %s393_s5, 4294967040  ;;  %p19_p11 = scmp.ge.s32.totalorder %s781_s21, 6   ;;  %s1042_s15 = smov %s711_s16 }
 0x1e9   : > { %s1043_s16 = smov %s715_s17  ;;  %s1044_s17 = smov %s793_s24 }
 0x1ea   : > { %s1045_s18 = smov %s781_s21  ;;  %21 = sbr.rel (!%p19_p11) target bundleno = 6 (0x6), region = 98 }
 0x1f1   :  { %398 = vsyncpa [#allocation3], 1 }
 0x1f2   :  { %400 = vsyncpa [#allocation3 + $0x1], 1 }
 0x1f3   :  { %401 = vsyncpa [#allocation6], 1 }
 0x1f4   :  { %403 = vsyncpa [#allocation6 + $0x1], 1 }
 0x1f5   :  { %404 = vsyncpa [#allocation4], 1 }
 0x1f6   :  { %406 = vsyncpa [#allocation4 + $0x1], 1 }

</bundles_post_ra>
